<compile_context>
chip_gen: v6e
topology: v6e:2x2x1
jax: 0.10.0
libtpu: 0.0.40
codegen_flags: <defaults>
</compile_context>

<pallas_src>
import functools

import jax
import jax.numpy as jnp
from jax.experimental import pallas as pl
from jax.experimental.pallas import tpu as pltpu

HIDDEN = 128
_MIN_CORE_TILE = 256  # below this per-core tile, splitting for megacore isn't worth it


def _round_up(x, m):
    return ((x + m - 1) // m) * m


def _bf16_transcendentals_supported():
    """v6e/v7x have a bf16 VPU/EUP; v5e and older do not (keep f32 tanh there)."""
    try:
        kind = jax.devices()[0].device_kind.lower()
    except Exception:
        return False
    return not any(v in kind for v in ("v2", "v3", "v4", "v5"))


def actor_kernel(obs_ref,
                 w1_ref, b1_ref,
                 w3_ref, b3_ref,
                 w4_ref, b4_ref,
                 w2_ref, b2_ref,
                 out_ref,
                 *, bf16_tanh):
    act_dtype = jnp.bfloat16 if bf16_tanh else jnp.float32

    def hidden_layer(h_bf16, w_ref, b_ref):
        # bf16 MXU inputs, f32 accumulate + f32 bias add; tanh in act_dtype.
        h = jnp.dot(h_bf16, w_ref[...], preferred_element_type=jnp.float32) + b_ref[...]
        h = jnp.tanh(h.astype(act_dtype))
        return h.astype(jnp.bfloat16)

    h = obs_ref[...].astype(jnp.bfloat16)
    h = hidden_layer(h, w1_ref, b1_ref)   # fc1 + tanh
    h = hidden_layer(h, w3_ref, b3_ref)   # fc3 + tanh
    h = hidden_layer(h, w4_ref, b4_ref)   # fc4 + tanh

    # fc2 (logits in f32)
    logits = jnp.dot(h, w2_ref[...], preferred_element_type=jnp.float32) + b2_ref[...]

    # softmax over dim=1 (action axis == last axis), exact normalization.
    m = jnp.max(logits, axis=-1, keepdims=True)
    e = jnp.exp(logits - m)
    out_ref[...] = (e / jnp.sum(e, axis=-1, keepdims=True)).astype(out_ref.dtype)


@functools.partial(jax.jit, static_argnames=("block_rows",))
def actor_forward(obs, params, *, block_rows=1024):
    """obs: (B, obs_size) float32. params: dict of transposed weights/biases."""
    B, obs_size = obs.shape
    hidden = params["w1"].shape[1]
    action_size = params["w2"].shape[1]

    bf16_tanh = _bf16_transcendentals_supported()  # resolved at trace time (static)

    # Batch tile: as large as possible to amortize the ~0.35 µs per-step grid
    # overhead (sweep block_rows in {512, 1024, 2048} if tuning).
    TB = block_rows if B >= block_rows else B
    # Guarantee at least 2 grid steps for large batches so the "parallel" batch
    # axis can be sharded across both v7x TensorCores (harmless extra step on
    # single-TC v5e/v6e).
    if B >= 2 * _MIN_CORE_TILE:
        TB = min(TB, _round_up(pl.cdiv(B, 2), 8))
    grid = (pl.cdiv(B, TB),)

    # Pre-cast weights to bf16 once (halves weight DMA bytes, full MXU issue
    # rate). Biases stay f32 for the f32 accumulate+add.
    w1 = params["w1"].astype(jnp.bfloat16)
    w3 = params["w3"].astype(jnp.bfloat16)
    w4 = params["w4"].astype(jnp.bfloat16)
    w2 = params["w2"].astype(jnp.bfloat16)
    b1, b3, b4, b2 = params["b1"], params["b3"], params["b4"], params["b2"]

    def resident(arr):
        # Full-array block, constant block index -> stays resident in VMEM
        # across all grid steps (no re-DMA).
        return pl.BlockSpec(arr.shape, lambda i: (0, 0))

    obs_spec = pl.BlockSpec((TB, obs_size), lambda i: (i, 0))
    out_spec = pl.BlockSpec((TB, action_size), lambda i: (i, 0))

    flops = 2 * B * (obs_size * hidden + 2 * hidden * hidden + hidden * action_size)
    transcendentals = B * (3 * hidden + action_size)
    bytes_accessed = (obs.size * 4 + B * action_size * 4
                      + (w1.size + w3.size + w4.size + w2.size) * 2
                      + (b1.size + b3.size + b4.size + b2.size) * 4)

    return pl.pallas_call(
        functools.partial(actor_kernel, bf16_tanh=bf16_tanh),
        out_shape=jax.ShapeDtypeStruct((B, action_size), jnp.float32),
        grid=grid,
        in_specs=[obs_spec,
                  resident(w1), resident(b1),
                  resident(w3), resident(b3),
                  resident(w4), resident(b4),
                  resident(w2), resident(b2)],
        out_specs=out_spec,
        compiler_params=pltpu.CompilerParams(
            dimension_semantics=("parallel",),
            vmem_limit_bytes=32 * 1024 * 1024,
        ),
        cost_estimate=pl.CostEstimate(
            flops=flops,
            transcendentals=transcendentals,
            bytes_accessed=bytes_accessed,
        ),
    )(obs, w1, b1, w3, b3, w4, b4, w2, b2)


def init_params(key, obs_size, action_size, hidden=HIDDEN):
    """Deterministic init mimicking nn.Linear's U(-1/sqrt(fan_in), 1/sqrt(fan_in)).
    Weights stored transposed: (in_features, out_features). Biases stored (1, out)."""
    def linear(key, fan_in, fan_out):
        kw, kb = jax.random.split(key)
        bound = 1.0 / jnp.sqrt(fan_in)
        w = jax.random.uniform(kw, (fan_in, fan_out), jnp.float32, -bound, bound)
        b = jax.random.uniform(kb, (1, fan_out), jnp.float32, -bound, bound)
        return w, b

    k1, k3, k4, k2 = jax.random.split(key, 4)
    w1, b1 = linear(k1, obs_size, hidden)
    w3, b3 = linear(k3, hidden, hidden)
    w4, b4 = linear(k4, hidden, hidden)
    w2, b2 = linear(k2, hidden, action_size)
    return {"w1": w1, "b1": b1, "w3": w3, "b3": b3,
            "w4": w4, "b4": b4, "w2": w2, "b2": b2}


def actor_ref(obs, p):
    """Pure-JAX f32 reference for correctness check (matches the PyTorch module)."""
    h = jnp.tanh(obs @ p["w1"] + p["b1"])
    h = jnp.tanh(h @ p["w3"] + p["b3"])
    h = jnp.tanh(h @ p["w4"] + p["b4"])
    logits = h @ p["w2"] + p["b2"]
    return jax.nn.softmax(logits, axis=1)


if __name__ == "__main__":
    key = jax.random.PRNGKey(0)
    k_obs, k_params = jax.random.split(key)

    batch = 8
    obs_size = 16
    action_size = 8

    obs = jax.random.normal(k_obs, (batch, obs_size), dtype=jnp.float32)
    params = init_params(k_params, obs_size, action_size)

    out = actor_forward(obs, params)
    out = jax.block_until_ready(out)

    ref = actor_ref(obs, params)
    assert out.shape == (batch, action_size)
    # Exact softmax normalization -> rows sum to 1 within f32 rounding.
    assert jnp.allclose(jnp.sum(out, axis=1), 1.0, atol=1e-5), jnp.sum(out, axis=1)
    # bf16 matmul inputs (and bf16 tanh on v6e/v7x) -> relaxed tolerance vs f32 ref.
    assert jnp.allclose(out, ref, atol=2e-2, rtol=2e-2), jnp.max(jnp.abs(out - ref))

    print("KERNEL_OK")
</pallas_src>

<mosaic_0001>
module attributes {stable_mosaic.version = 11 : i64} {
  func.func @actor_kernel(%arg0: i32, %arg1: memref<8x16xf32, #tpu.memory_space<vmem>>, %arg2: memref<16x128xbf16, #tpu.memory_space<vmem>>, %arg3: memref<1x128xf32, #tpu.memory_space<vmem>>, %arg4: memref<128x128xbf16, #tpu.memory_space<vmem>>, %arg5: memref<1x128xf32, #tpu.memory_space<vmem>>, %arg6: memref<128x128xbf16, #tpu.memory_space<vmem>>, %arg7: memref<1x128xf32, #tpu.memory_space<vmem>>, %arg8: memref<128x8xbf16, #tpu.memory_space<vmem>>, %arg9: memref<1x8xf32, #tpu.memory_space<vmem>>, %arg10: memref<8x8xf32, #tpu.memory_space<vmem>>) attributes {dimension_semantics = [#tpu.dimension_semantics<parallel>], iteration_bounds = array<i64: 1>, scalar_prefetch = 0 : i64, scratch_operands = 0 : i64, tpu.core_type = #tpu.core_type<tc>, window_params = [{transform_indices = @transform_0, window_bounds = array<i64: 8, 16>}, {pipeline_mode = #tpu.pipeline_mode<synchronous>, transform_indices = @transform_1, window_bounds = array<i64: 16, 128>}, {pipeline_mode = #tpu.pipeline_mode<synchronous>, transform_indices = @transform_2, window_bounds = array<i64: 1, 128>}, {pipeline_mode = #tpu.pipeline_mode<synchronous>, transform_indices = @transform_3, window_bounds = array<i64: 128, 128>}, {pipeline_mode = #tpu.pipeline_mode<synchronous>, transform_indices = @transform_4, window_bounds = array<i64: 1, 128>}, {pipeline_mode = #tpu.pipeline_mode<synchronous>, transform_indices = @transform_5, window_bounds = array<i64: 128, 128>}, {pipeline_mode = #tpu.pipeline_mode<synchronous>, transform_indices = @transform_6, window_bounds = array<i64: 1, 128>}, {pipeline_mode = #tpu.pipeline_mode<synchronous>, transform_indices = @transform_7, window_bounds = array<i64: 128, 8>}, {pipeline_mode = #tpu.pipeline_mode<synchronous>, transform_indices = @transform_8, window_bounds = array<i64: 1, 8>}, {transform_indices = @transform_9, window_bounds = array<i64: 8, 8>}]} {
    %c0 = arith.constant 0 : index
    %c0_0 = arith.constant 0 : index
    %0 = vector.load %arg1[%c0, %c0_0] : memref<8x16xf32, #tpu.memory_space<vmem>>, vector<8x16xf32>
    %1 = arith.truncf %0 : vector<8x16xf32> to vector<8x16xbf16>
    %c0_1 = arith.constant 0 : index
    %c0_2 = arith.constant 0 : index
    %2 = vector.load %arg2[%c0_1, %c0_2] : memref<16x128xbf16, #tpu.memory_space<vmem>>, vector<16x128xbf16>
    %cst = arith.constant dense<0.000000e+00> : vector<8x128xf32>
    %3 = tpu.matmul %1, %2, %cst {dimension_numbers = #tpu.dot_dimension_numbers<[1], [0], [0], [1], [0, 0, 1, 1], [], []>} : vector<8x16xbf16>, vector<16x128xbf16>, vector<8x128xf32> -> vector<8x128xf32>
    %c0_3 = arith.constant 0 : index
    %c0_4 = arith.constant 0 : index
    %4 = vector.load %arg3[%c0_3, %c0_4] : memref<1x128xf32, #tpu.memory_space<vmem>>, vector<1x128xf32>
    %5 = vector.broadcast %4 : vector<1x128xf32> to vector<8x128xf32>
    %6 = arith.addf %3, %5 : vector<8x128xf32>
    %7 = arith.truncf %6 : vector<8x128xf32> to vector<8x128xbf16>
    %8 = math.tanh %7 : vector<8x128xbf16>
    %c0_5 = arith.constant 0 : index
    %c0_6 = arith.constant 0 : index
    %9 = vector.load %arg4[%c0_5, %c0_6] : memref<128x128xbf16, #tpu.memory_space<vmem>>, vector<128x128xbf16>
    %cst_7 = arith.constant dense<0.000000e+00> : vector<8x128xf32>
    %10 = tpu.matmul %8, %9, %cst_7 {dimension_numbers = #tpu.dot_dimension_numbers<[1], [0], [0], [1], [0, 0, 1, 1], [], []>} : vector<8x128xbf16>, vector<128x128xbf16>, vector<8x128xf32> -> vector<8x128xf32>
    %c0_8 = arith.constant 0 : index
    %c0_9 = arith.constant 0 : index
    %11 = vector.load %arg5[%c0_8, %c0_9] : memref<1x128xf32, #tpu.memory_space<vmem>>, vector<1x128xf32>
    %12 = vector.broadcast %11 : vector<1x128xf32> to vector<8x128xf32>
    %13 = arith.addf %10, %12 : vector<8x128xf32>
    %14 = arith.truncf %13 : vector<8x128xf32> to vector<8x128xbf16>
    %15 = math.tanh %14 : vector<8x128xbf16>
    %c0_10 = arith.constant 0 : index
    %c0_11 = arith.constant 0 : index
    %16 = vector.load %arg6[%c0_10, %c0_11] : memref<128x128xbf16, #tpu.memory_space<vmem>>, vector<128x128xbf16>
    %cst_12 = arith.constant dense<0.000000e+00> : vector<8x128xf32>
    %17 = tpu.matmul %15, %16, %cst_12 {dimension_numbers = #tpu.dot_dimension_numbers<[1], [0], [0], [1], [0, 0, 1, 1], [], []>} : vector<8x128xbf16>, vector<128x128xbf16>, vector<8x128xf32> -> vector<8x128xf32>
    %c0_13 = arith.constant 0 : index
    %c0_14 = arith.constant 0 : index
    %18 = vector.load %arg7[%c0_13, %c0_14] : memref<1x128xf32, #tpu.memory_space<vmem>>, vector<1x128xf32>
    %19 = vector.broadcast %18 : vector<1x128xf32> to vector<8x128xf32>
    %20 = arith.addf %17, %19 : vector<8x128xf32>
    %21 = arith.truncf %20 : vector<8x128xf32> to vector<8x128xbf16>
    %22 = math.tanh %21 : vector<8x128xbf16>
    %c0_15 = arith.constant 0 : index
    %c0_16 = arith.constant 0 : index
    %23 = vector.load %arg8[%c0_15, %c0_16] : memref<128x8xbf16, #tpu.memory_space<vmem>>, vector<128x8xbf16>
    %cst_17 = arith.constant dense<0.000000e+00> : vector<8x8xf32>
    %24 = tpu.matmul %22, %23, %cst_17 {dimension_numbers = #tpu.dot_dimension_numbers<[1], [0], [0], [1], [0, 0, 1, 1], [], []>} : vector<8x128xbf16>, vector<128x8xbf16>, vector<8x8xf32> -> vector<8x8xf32>
    %c0_18 = arith.constant 0 : index
    %c0_19 = arith.constant 0 : index
    %25 = vector.load %arg9[%c0_18, %c0_19] : memref<1x8xf32, #tpu.memory_space<vmem>>, vector<1x8xf32>
    %26 = vector.broadcast %25 : vector<1x8xf32> to vector<8x8xf32>
    %27 = arith.addf %24, %26 : vector<8x8xf32>
    %cst_20 = arith.constant dense<0xFF800000> : vector<8xf32>
    %28 = vector.multi_reduction <maximumf>, %27, %cst_20 [1] : vector<8x8xf32> to vector<8xf32>
    %29 = vector.shape_cast %28 : vector<8xf32> to vector<8x1xf32>
    %30 = vector.broadcast %29 : vector<8x1xf32> to vector<8x8xf32>
    %31 = arith.subf %27, %30 : vector<8x8xf32>
    %32 = math.exp %31 : vector<8x8xf32>
    %cst_21 = arith.constant dense<0.000000e+00> : vector<8xf32>
    %33 = vector.multi_reduction <add>, %32, %cst_21 [1] : vector<8x8xf32> to vector<8xf32>
    %34 = vector.shape_cast %33 : vector<8xf32> to vector<8x1xf32>
    %35 = vector.broadcast %34 : vector<8x1xf32> to vector<8x8xf32>
    %36 = arith.divf %32, %35 : vector<8x8xf32>
    %c0_22 = arith.constant 0 : index
    %c0_23 = arith.constant 0 : index
    %37 = vector.load %arg10[%c0_22, %c0_23] : memref<8x8xf32, #tpu.memory_space<vmem>>, vector<8x8xf32>
    tpu.vector_store %arg10[%c0_22, %c0_23], %36 {strides = array<i32>} : memref<8x8xf32, #tpu.memory_space<vmem>>, vector<8x8xf32>,
    return
  }
  func.func @transform_0(%arg0: i32) -> (i32, i32) {
    %c0_i32 = arith.constant 0 : i32
    %c0_i32_0 = arith.constant 0 : i32
    return %arg0, %c0_i32 : i32, i32
  }
  func.func @transform_1(%arg0: i32) -> (i32, i32) {
    %c0_i32 = arith.constant 0 : i32
    %c0_i32_0 = arith.constant 0 : i32
    %c0_i32_1 = arith.constant 0 : i32
    return %c0_i32, %c0_i32_0 : i32, i32
  }
  func.func @transform_2(%arg0: i32) -> (i32, i32) {
    %c0_i32 = arith.constant 0 : i32
    %c0_i32_0 = arith.constant 0 : i32
    %c0_i32_1 = arith.constant 0 : i32
    return %c0_i32, %c0_i32_0 : i32, i32
  }
  func.func @transform_3(%arg0: i32) -> (i32, i32) {
    %c0_i32 = arith.constant 0 : i32
    %c0_i32_0 = arith.constant 0 : i32
    %c0_i32_1 = arith.constant 0 : i32
    return %c0_i32, %c0_i32_0 : i32, i32
  }
  func.func @transform_4(%arg0: i32) -> (i32, i32) {
    %c0_i32 = arith.constant 0 : i32
    %c0_i32_0 = arith.constant 0 : i32
    %c0_i32_1 = arith.constant 0 : i32
    return %c0_i32, %c0_i32_0 : i32, i32
  }
  func.func @transform_5(%arg0: i32) -> (i32, i32) {
    %c0_i32 = arith.constant 0 : i32
    %c0_i32_0 = arith.constant 0 : i32
    %c0_i32_1 = arith.constant 0 : i32
    return %c0_i32, %c0_i32_0 : i32, i32
  }
  func.func @transform_6(%arg0: i32) -> (i32, i32) {
    %c0_i32 = arith.constant 0 : i32
    %c0_i32_0 = arith.constant 0 : i32
    %c0_i32_1 = arith.constant 0 : i32
    return %c0_i32, %c0_i32_0 : i32, i32
  }
  func.func @transform_7(%arg0: i32) -> (i32, i32) {
    %c0_i32 = arith.constant 0 : i32
    %c0_i32_0 = arith.constant 0 : i32
    %c0_i32_1 = arith.constant 0 : i32
    return %c0_i32, %c0_i32_0 : i32, i32
  }
  func.func @transform_8(%arg0: i32) -> (i32, i32) {
    %c0_i32 = arith.constant 0 : i32
    %c0_i32_0 = arith.constant 0 : i32
    %c0_i32_1 = arith.constant 0 : i32
    return %c0_i32, %c0_i32_0 : i32, i32
  }
  func.func @transform_9(%arg0: i32) -> (i32, i32) {
    %c0_i32 = arith.constant 0 : i32
    %c0_i32_0 = arith.constant 0 : i32
    return %arg0, %c0_i32 : i32, i32
  }
}

</mosaic_0001>

<bundles_post_ra>
// kernel: actor_forward.1
= control target key start
LH: loop header
LB: loop body
LE: loop exit
PB: predicated region body
PF: predicated region fallthrough
CT: control target
= control target key end

     0   :  { %v646_v1 = vmov 0.0   ;;  %vm51_vm0 = vcmask 130048   ;;  %vm647_vm1 = vmmov 0   ;;  %s828_s0 = inlined_call_operand.vmem [shape: f32[8,16], index: 0, kind: input, shape index: {}]   ;;  %s829_s1 = inlined_call_operand.vmem [shape: bf16[16,128], index: 1, kind: input, shape index: {}]   ;;  %s830_s2 = inlined_call_operand.vmem [shape: f32[1,128], index: 2, kind: input, shape index: {}]   ;;  %s831_s3 = inlined_call_operand.vmem [shape: bf16[128,128], index: 3, kind: input, shape index: {}]   ;;  %s832_s4 = inlined_call_operand.vmem [shape: f32[1,128], index: 4, kind: input, shape index: {}]   ;;  %s833_s5 = inlined_call_operand.vmem [shape: bf16[128,128], index: 5, kind: input, shape index: {}]   ;;  %s834_s6 = inlined_call_operand.vmem [shape: f32[1,128], index: 6, kind: input, shape index: {}]   ;;  %s835_s7 = inlined_call_operand.vmem [shape: bf16[128,8], index: 7, kind: input, shape index: {}]   ;;  %s836_s8 = inlined_call_operand.vmem [shape: f32[1,8], index: 8, kind: input, shape index: {}]   ;;  %s837_s9 = inlined_call_operand.hbm [shape: f32[8,8], index: 9, kind: output, shape index: {}]  }
   0x1   :  { %v589_v0 = vld [vmem:[%s829_s1] sm:$0xff]   ;;  %520 = vmatprep.subr.bf16.mxu0 %v646_v1  ;;  %526 = vmatprep.subr.bf16.mxu1 %v646_v1  ;;  %v590_v3 = vld [vmem:[%s831_s3 + $0x38] sm:$0xff]   ;;  %v591_v5 = vld [vmem:[%s831_s3 + $0x30] sm:$0xff]  }
   0x2   :  { %v34_v2 = vld [vmem:[%s828_s0] sm:$0xff]  ;;  %521 = vmatpush3.bf16.msra.mxu0 %v589_v0  ;;  %522 = vmatprep.mubr.msk.bf16.mxu0 %vm647_vm1, %v646_v1  ;;  %v592_v6 = vld [vmem:[%s831_s3 + $0x28] sm:$0xff]  }
   0x3   :  { %v35_v4 = vpack.c.bf16 %v34_v2, %v34_v2  ;;  %527 = vmatpush3.bf16.msra.mxu1 %v590_v3  ;;  %542 = vmatprep.mubr.msk.bf16.mxu1 %vm647_vm1, %v646_v1 }
   0x4   :  { %528 = vmatprep.subr.bf16.mxu1 %v646_v1  ;;  %546 = vmatprep.subr.bf16.mxu0 %v646_v1 }
   0x5   :  { %523 = vmatmul.mubr.msk.bf16.vlgmr.msra.gmra.mxu0 %vm51_vm0, %v35_v4 }
   0x6   :  { %562 = vmatprep.mubr.msk.bf16.mxu0 %vm647_vm1, %v646_v1 }
   0x7   :  { %529 = vmatpush3.bf16.msra.mxu1 %v591_v5 }
   0x8   :  { %530 = vmatprep.subr.bf16.mxu1 %v646_v1 }
   0xb   :  { %531 = vmatpush3.bf16.msra.mxu1 %v592_v6 }
   0xc   :  { %532 = vmatprep.subr.bf16.mxu1 %v646_v1 }
   0xd   :  { %14 = vsyncpa [#allocation3], 0  ;;  %v593_v7 = vld [vmem:[%s831_s3 + $0x20] sm:$0xff]   ;;  %v594_v8 = vld [vmem:[%s831_s3 + $0x18] sm:$0xff]   ;;  %vm434_vm2 = vcmask 64512  }
   0xe   :  { %v595_v9 = vld [vmem:[%s831_s3 + $0x10] sm:$0xff]   ;;  %v596_v10 = vld [vmem:[%s831_s3 + $0x8] sm:$0xff]   ;;  %v597_v11 = vld [vmem:[%s831_s3] sm:$0xff]  }
   0xf   :  { %533 = vmatpush3.bf16.msra.mxu1 %v593_v7  ;;  %v598_v12 = vld [vmem:[%s833_s5 + $0x38] sm:$0xff]   ;;  %v599_v13 = vld [vmem:[%s833_s5 + $0x30] sm:$0xff]   ;;  %v600_v14 = vld [vmem:[%s833_s5 + $0x28] sm:$0xff]  }
  0x10   :  { %534 = vmatprep.subr.bf16.mxu1 %v646_v1  ;;  %547 = vmatpush3.bf16.msra.mxu0 %v598_v12  ;;  %v461_v15 = vld [vmem:[%s830_s2] ss:$0 sm:$0xff]  ;;  %v602_v24 = vld [vmem:[%s833_s5 + $0x18] sm:$0xff]   ;;  %v603_v25 = vld [vmem:[%s833_s5 + $0x10] sm:$0xff]  }
  0x11   :  { %548 = vmatprep.subr.bf16.mxu0 %v646_v1  ;;  %v601_v23 = vld [vmem:[%s833_s5 + $0x20] sm:$0xff]   ;;  %v604_v26 = vld [vmem:[%s833_s5 + $0x8] sm:$0xff]   ;;  %v606_v28 = vld [vmem:[%s835_s7 + $0x38] sm:$0xff]  }
  0x12   :  { %v605_v27 = vld [vmem:[%s833_s5] sm:$0xff]   ;;  %v607_v29 = vld [vmem:[%s835_s7 + $0x30] sm:$0xff]   ;;  %v608_v30 = vld [vmem:[%s835_s7 + $0x28] sm:$0xff]  }
  0x13   :  { %535 = vmatpush3.bf16.msra.mxu1 %v594_v8  ;;  %v464_v31 = vld [vmem:[%s832_s4] ss:$0 sm:$0xff]  ;;  %v610_v40 = vld [vmem:[%s835_s7 + $0x18] sm:$0xff]   ;;  %v611_v41 = vld [vmem:[%s835_s7 + $0x10] sm:$0xff]  }
  0x14   :  { %536 = vmatprep.subr.bf16.mxu1 %v646_v1  ;;  %549 = vmatpush3.bf16.msra.mxu0 %v599_v13  ;;  %v609_v39 = vld [vmem:[%s835_s7 + $0x20] sm:$0xff]   ;;  %v612_v42 = vld [vmem:[%s835_s7 + $0x8] sm:$0xff]  }
  0x15   :  { %550 = vmatprep.subr.bf16.mxu0 %v646_v1  ;;  %v613_v43 = vld [vmem:[%s835_s7] sm:$0xff]  }
  0x16   :  { %v473_v44 = vld [vmem:[%s834_s6] ss:$0 sm:$0xff]  ;;  %s648_s6 = smov [#allocation2]  }
  0x17   :  { %537 = vmatpush3.bf16.msra.mxu1 %v595_v9  ;;  %v482_v52 = vld [vmem:[%s836_s8] ss:$0 sm:$0xff]  ;;  %s453_s7 = sshll.u32 %s648_s6, 4  ;;  %s454_s7 = int_to_ptr.vmem [resolvable:$true] %s453_s7 }
  0x18   :  { %538 = vmatprep.subr.bf16.mxu1 %v646_v1  ;;  %551 = vmatpush3.bf16.msra.mxu0 %v600_v14  ;;  %s624_s8 = scalar_lea.vmem %s454_s7, 128  ;;  %p629_p1 = scmp.lt.s32.totalorder %s454_s7, %s454_s7 }
  0x19   :  { %552 = vmatprep.subr.bf16.mxu0 %v646_v1  ;;  %p625_p0 = scmp.ne.s32.totalorder %s454_s7, %s624_s8  ;;  %p630_p2 = scmp.lt.s32.totalorder %s624_s8, %s624_s8 }
  0x1b   :  { %539 = vmatpush3.bf16.msra.mxu1 %v596_v10  ;;  %p631_p3 = por %p630_p2, %p629_p1 }
  0x1c   :  { %540 = vmatprep.subr.bf16.mxu1 %v646_v1  ;;  %553 = vmatpush3.bf16.msra.mxu0 %v601_v23 }
  0x1d   :  { %554 = vmatprep.subr.bf16.mxu0 %v646_v1  ;;  %p632_p4 = pnand %p631_p3, %p625_p0 }
  0x1f   :  { %541 = vmatpush3.bf16.msra.mxu1 %v597_v11 }
  0x20   :  { %566 = vmatprep.subr.bf16.mxu1 %v646_v1  ;;  %555 = vmatpush3.bf16.msra.mxu0 %v602_v24 }
  0x21   :  { %556 = vmatprep.subr.bf16.mxu0 %v646_v1 }
  0x24   :  { %557 = vmatpush3.bf16.msra.mxu0 %v603_v25 }
  0x25   :  { %558 = vmatprep.subr.bf16.mxu0 %v646_v1 }
  0x28   :  { %559 = vmatpush3.bf16.msra.mxu0 %v604_v26 }
  0x29   :  { %560 = vmatprep.subr.bf16.mxu0 %v646_v1 }
  0x2c   :  { %561 = vmatpush3.bf16.msra.mxu0 %v605_v27 }
  0xc5   :  { %v89_v16 = vpop.f32.mrf.mxu0 }
  0xc6   :  { %v90_v17 = vadd.f32 %v461_v15, %v89_v16 }
  0xc7   :  { %v524_v18 = vpop.f32.mrf.mxu0 }
  0xc8   :  { %v95_v19 = vpack.c.bf16 %v90_v17, %v90_v17 }
  0xc9   :  { %v92_v20 = vpop.f32.mrf.mxu0 }
  0xca   :  { %614 = vtanh.bf16 %v95_v19 }
  0xcb   :  { %v525_v21 = vpop.f32.mrf.mxu0 }
  0xd8   :  { %v615_v22 = vpop.eup %614 }
  0xd9   :  { %543 = vmatmul.mubr.bf16.vlgmr.msra.gmra.mxu1 %v615_v22 }
  0xda   :  { %582 = vmatprep.mubr.msk.bf16.mxu1 %vm647_vm1, %v646_v1  ;;  %567 = vmatpush3.bf16.msra.mxu1 %v606_v28 }
  0xdb   :  { %568 = vmatprep.subr.bf16.mxu1 %v646_v1 }
  0xde   :  { %569 = vmatpush3.bf16.msra.mxu1 %v607_v29 }
  0xdf   :  { %570 = vmatprep.subr.bf16.mxu1 %v646_v1 }
  0xe2   :  { %571 = vmatpush3.bf16.msra.mxu1 %v608_v30 }
  0xe3   :  { %572 = vmatprep.subr.bf16.mxu1 %v646_v1 }
  0xe6   :  { %573 = vmatpush3.bf16.msra.mxu1 %v609_v39 }
  0xe7   :  { %574 = vmatprep.subr.bf16.mxu1 %v646_v1 }
  0xea   :  { %575 = vmatpush3.bf16.msra.mxu1 %v610_v40 }
  0xeb   :  { %576 = vmatprep.subr.bf16.mxu1 %v646_v1 }
  0xee   :  { %577 = vmatpush3.bf16.msra.mxu1 %v611_v41 }
  0xef   :  { %578 = vmatprep.subr.bf16.mxu1 %v646_v1 }
  0xf2   :  { %579 = vmatpush3.bf16.msra.mxu1 %v612_v42 }
  0xf3   :  { %580 = vmatprep.subr.bf16.mxu1 %v646_v1 }
  0xf6   :  { %581 = vmatpush3.bf16.msra.mxu1 %v613_v43 }
 0x199   :  { %v202_v32 = vpop.f32.mrf.mxu1 }
 0x19a   :  { %v203_v33 = vadd.f32 %v464_v31, %v202_v32 }
 0x19b   :  { %v544_v34 = vpop.f32.mrf.mxu1 }
 0x19c   :  { %v208_v35 = vpack.c.bf16 %v203_v33, %v203_v33 }
 0x19d   :  { %v205_v36 = vpop.f32.mrf.mxu1 }
 0x19e   :  { %616 = vtanh.bf16 %v208_v35 }
 0x19f   :  { %v545_v37 = vpop.f32.mrf.mxu1 }
 0x1ac   :  { %v617_v38 = vpop.eup %616 }
 0x1ad   :  { %563 = vmatmul.mubr.bf16.vlgmr.msra.gmra.mxu0 %v617_v38 }
 0x26d   :  { %v315_v45 = vpop.f32.mrf.mxu0 }
 0x26e   :  { %v316_v46 = vadd.f32 %v473_v44, %v315_v45 }
 0x26f   :  { %v564_v47 = vpop.f32.mrf.mxu0 }
 0x270   :  { %v321_v48 = vpack.c.bf16 %v316_v46, %v316_v46 }
 0x271   :  { %v318_v49 = vpop.f32.mrf.mxu0 }
 0x272   :  { %618 = vtanh.bf16 %v321_v48 }
 0x273   :  { %v565_v50 = vpop.f32.mrf.mxu0 }
 0x280   :  { %v619_v51 = vpop.eup %618 }
 0x281   :  { %583 = vmatmul.mubr.bf16.vlgmr.msra.gmra.mxu1 %v619_v51 }
 0x341   :  { %v428_v53 = vpop.f32.mrf.mxu1 }
 0x342   :  { %v429_v54 = vadd.f32 %v482_v52, %v428_v53 }
 0x343   :  { %v584_v55 = vpop.f32.mrf.mxu1 }
 0x344   :  { %v435_v56 = vsel %vm434_vm2, %v429_v54, -inf }
 0x345   :  { %436 = vmax.xlane.f32.xlu0 %v435_v56  ;;  %v431_v57 = vpop.f32.mrf.mxu1 }
 0x347   :  { %v585_v58 = vpop.f32.mrf.mxu1 }
 0x3ce   :  { %v437_v59 = vpop.xlane.xlu0 %436 }
 0x3cf   :  { %v438_v60 = vsub.f32 %v429_v54, %v437_v59 }
 0x3d1   :  { %v439_v61 = vmul.f32 1.442695, %v438_v60 }
 0x3d3   :  { %620 = vpow2.f32 %v439_v61 }
 0x3e0   :  { %v621_v62 = vpop.eup %620 }
 0x3e1   :  { %v441_v63 = vsel %vm434_vm2, %v621_v62, 0.0 }
 0x3e2   :  { %442 = vadd.xlane.f32.xlu0 %v441_v63 }
 0x46b   :  { %v443_v0 = vpop.xlane.xlu0 %442 }
 0x46c   :  { %622 = vrcp.f32 %v443_v0 }
 0x479   :  { %v623_v1 = vpop.eup %622 }
 0x47a   :  { %v445_v2 = vmul.f32 %v623_v1, %v621_v62 }
 0x47c   :  { %446 = vst.msk [vmem:[#allocation2] sm:$0xff] %vm434_vm2, %v445_v2 }
 0x47d   :  { %635 = shalt.err (!%p632_p4)
}
 0x47e   :  { %456 = dma.vmem_to_hbm [thread:$0]  %s454_s7, 128, %s837_s9, [#allocation3]  }
 0x47f   :  { %644 = dma.done.wait [#allocation3], 128  }
 0x480   :  { %645 = vsyncadd [#allocation3], 4294967168 }
 0x481   :  { %460 = vsyncpa [#allocation3], 1 }

</bundles_post_ra>
